<compile_context>
chip_gen: v7x
topology: tpu7x:2x2x1
jax: 0.10.0
libtpu: 0.0.40
codegen_flags: <defaults>
</compile_context>

<pallas_src>
import numpy as np
import jax
import jax.numpy as jnp
from jax.experimental import pallas as pl
from jax.experimental.pallas import tpu as pltpu

N_QUBITS = 4                    # input_dim
N_LAYERS = 1
N_TRAINABLE_BLOCK_LAYERS = 3
DIM = 2 ** N_QUBITS
DIM2 = 2 * DIM                  # packed [re | im] width
N_SUBSETS = 2 ** N_QUBITS       # commuting-RX expansion terms
BATCH = 8


# --------------------------------------------------------------------------
# numpy glue: constant (weight-only) unitaries & folded lookup tables
# --------------------------------------------------------------------------
def _kron_list(mats):
    out = np.array([[1.0 + 0.0j]])
    for m in mats:
        out = np.kron(out, m)
    return out


def _single_gate_full(gate, wire, n):
    mats = [np.eye(2, dtype=complex) for _ in range(n)]
    mats[wire] = gate
    return _kron_list(mats)


def _rz(a):
    return np.array([[np.exp(-1j * a / 2), 0.0], [0.0, np.exp(1j * a / 2)]])


def _ry(a):
    c, s = np.cos(a / 2), np.sin(a / 2)
    return np.array([[c, -s], [s, c]], dtype=complex)


def _rx(a):
    c, s = np.cos(a / 2), np.sin(a / 2)
    return np.array([[c, -1j * s], [-1j * s, c]])


def _rot(phi, theta, omega):
    # qml.Rot(phi, theta, omega) = RZ(omega) RY(theta) RZ(phi)
    return _rz(omega) @ _ry(theta) @ _rz(phi)


def _cnot_full(control, target, n):
    D = 2 ** n
    U = np.zeros((D, D), dtype=complex)
    for j in range(D):
        bc = (j >> (n - 1 - control)) & 1
        j2 = j ^ (1 << (n - 1 - target)) if bc else j
        U[j2, j] = 1.0
    return U


def _sel_unitary(theta, n):
    """Full unitary of StronglyEntanglingLayers(theta), theta shape (L, n, 3)."""
    D = 2 ** n
    U = np.eye(D, dtype=complex)
    L = theta.shape[0]
    for l in range(L):
        layer_U = np.eye(D, dtype=complex)
        for i in range(n):
            g = _rot(theta[l, i, 0], theta[l, i, 1], theta[l, i, 2])
            layer_U = _single_gate_full(g, i, n) @ layer_U
        if n > 1:
            r = l % (n - 1) + 1
            for i in range(n):
                layer_U = _cnot_full(i, (i + r) % n, n) @ layer_U
        U = layer_U @ U
    return U


def _pack_complex_rowop(U):
    """Pack complex U (applied as psi_row @ pack) into a real (2D,2D) matrix."""
    Ut = U.T
    return np.block([[np.real(Ut), np.imag(Ut)],
                     [-np.imag(Ut), np.real(Ut)]]).astype(np.float32)


def _build_tables(weights_np, w_lin_np):
    """Host-side folding of all x-independent constants."""
    assert N_LAYERS >= 1, "N_LAYERS == 0 is a constant circuit; handle on host"
    n, D = N_QUBITS, DIM
    n_sub = N_SUBSETS

    U = [_sel_unitary(weights_np[b], n) for b in range(N_LAYERS + 1)]

    # Subset operators of the commuting-RX expansion: A_S = prod_{q in S}(-i X_q).
    X = np.array([[0.0, 1.0], [1.0, 0.0]], dtype=complex)
    A = []
    for S in range(n_sub):
        mats = []
        for q in range(n):
            bit = (S >> (n - 1 - q)) & 1
            mats.append((-1j) * X if bit else np.eye(2, dtype=complex))
        A.append(_kron_list(mats))

    # Layer 0 acts on the constant SEL_0|0..0>; fold SEL_1 @ A_S @ SEL_0|0..0>
    # into 16 constant packed rows.
    psi0 = U[0][:, 0]
    r0 = np.zeros((n_sub, 2 * D), dtype=np.float32)
    for S in range(n_sub):
        v = U[1] @ (A[S] @ psi0)
        r0[S, :D] = np.real(v)
        r0[S, D:] = np.imag(v)

    # Extra-layer tables (only if N_LAYERS > 1): block S of layer l is the
    # packed row-op of  SEL_{l+1} @ A_S.
    if N_LAYERS > 1:
        tables = np.zeros((N_LAYERS - 1, 2 * D, n_sub * 2 * D), dtype=np.float32)
        for l in range(1, N_LAYERS):
            for S in range(n_sub):
                tables[l - 1, :, S * 2 * D:(S + 1) * 2 * D] = \
                    _pack_complex_rowop(U[l + 1] @ A[S])
    else:
        tables = None

    # PauliZ sign table folded with the linear head into a single (1, 2D) row
    # (re and im halves share signs).
    signs = np.zeros((D, n), dtype=np.float64)
    for j in range(D):
        for i in range(n):
            signs[j, i] = 1.0 - 2.0 * ((j >> (n - 1 - i)) & 1)
    sw = signs @ w_lin_np.T                                        # (D, 1)
    sw_row = np.concatenate([sw[:, 0], sw[:, 0]])[None, :].astype(np.float32)

    return r0, tables, sw_row, signs


# --------------------------------------------------------------------------
# Pallas kernel: subset-coefficient contraction (VPU) + folded readout
# --------------------------------------------------------------------------
def _tree_sum(terms):
    """Balanced-tree sum to keep the add dependency chain short."""
    while len(terms) > 1:
        nxt = [terms[i] + terms[i + 1] for i in range(0, len(terms) - 1, 2)]
        if len(terms) % 2:
            nxt.append(terms[-1])
        terms = nxt
    return terms[0]


def make_quantum_kernel(n_extra_layers, n_qubits, dim2, n_subsets):
    def kernel(*refs):
        if n_extra_layers > 0:
            x_ref, r0_ref, tbl_ref, sw_ref, out_ref = refs
        else:
            x_ref, r0_ref, sw_ref, out_ref = refs
            tbl_ref = None

        B = x_ref.shape[0]
        x = x_ref[...]
        c = jnp.cos(0.5 * x)                      # (B, NQ) RX half-angle cosines
        s = jnp.sin(0.5 * x)                      # (B, NQ)

        # Subset coefficients coeff[b, S] = prod_q (s_q if bit_q(S) else c_q),
        # built from an iota bit mask with arithmetic blends (pure VPU).
        idx = jax.lax.broadcasted_iota(jnp.int32, (B, n_subsets), 1)
        coeff = None
        for q in range(n_qubits):
            bit = ((idx >> (n_qubits - 1 - q)) & 1).astype(jnp.float32)
            factor = c[:, q:q + 1] + bit * (s[:, q:q + 1] - c[:, q:q + 1])
            coeff = factor if coeff is None else coeff * factor

        # Layer 0: psi[b] = sum_S coeff[b,S] * R0[S]  -- pure VPU FMAs, no MXU.
        r0 = r0_ref[...]
        psi = _tree_sum([coeff[:, S:S + 1] * r0[S:S + 1, :]
                         for S in range(n_subsets)])

        # Extra data re-uploading layers (N_LAYERS > 1 only): one wide dot with
        # pinned precision + 16 VPU FMAs per layer.
        for l in range(n_extra_layers):
            wide = jnp.dot(psi, tbl_ref[l],
                           precision=jax.lax.Precision.DEFAULT,
                           preferred_element_type=jnp.float32)
            psi = _tree_sum([coeff[:, S:S + 1] * wide[:, S * dim2:(S + 1) * dim2]
                             for S in range(n_subsets)])

        # Readout: probs = re^2 + im^2; PauliZ signs and linear head folded
        # into sw_ref.  VPU multiply + XLU cross-lane reduce (no MXU).
        out_ref[...] = jnp.sum(psi * psi * sw_ref[...], axis=-1, keepdims=True)

    return kernel


def quantum_regression_forward(x, r0, tables, sw_row):
    B = x.shape[0]
    n_extra = 0 if tables is None else tables.shape[0]
    kernel = make_quantum_kernel(n_extra, N_QUBITS, DIM2, N_SUBSETS)
    args = [x, r0] + ([tables] if n_extra > 0 else []) + [sw_row]
    # Gridless: at B=8, D=16 the whole problem is a handful of vregs; a grid
    # step (~0.35us) would exceed the entire compute.  For very large batches,
    # add a batch grid with 128-row blocks, a lane-dense output slab, and
    # dimension_semantics=("parallel",) (v7x: 2 TCs).
    return pl.pallas_call(
        kernel,
        out_shape=jax.ShapeDtypeStruct((B, 1), jnp.float32),
        in_specs=[pl.BlockSpec(memory_space=pltpu.MemorySpace.VMEM)] * len(args),
        out_specs=pl.BlockSpec(memory_space=pltpu.MemorySpace.VMEM),
    )(*args)


# --------------------------------------------------------------------------
# numpy reference (mirrors PennyLane default.qubit semantics)
# --------------------------------------------------------------------------
def reference_forward(x_np, weights_np, w_lin_np, signs_np):
    n, D = N_QUBITS, DIM
    sel_Us = [_sel_unitary(weights_np[b], n) for b in range(N_LAYERS + 1)]
    B = x_np.shape[0]
    out = np.zeros((B, 1))
    for b in range(B):
        psi = np.zeros(D, dtype=complex)
        psi[0] = 1.0
        for l in range(N_LAYERS):
            psi = sel_Us[l] @ psi
            for i in range(n):
                psi = _single_gate_full(_rx(x_np[b, i]), i, n) @ psi
        psi = sel_Us[-1] @ psi
        probs = np.abs(psi) ** 2
        z = probs @ signs_np
        out[b, 0] = float(z @ w_lin_np[0])
    return out


if __name__ == "__main__":
    key = jax.random.PRNGKey(0)
    k_w, k_lin, k_x = jax.random.split(key, 3)

    # TorchLayer default init for SEL weights: uniform [0, 2*pi)
    weights = jax.random.uniform(
        k_w, (N_LAYERS + 1, N_TRAINABLE_BLOCK_LAYERS, N_QUBITS, 3),
        minval=0.0, maxval=2.0 * np.pi, dtype=jnp.float32)
    # nn.Linear(n_qubits, 1, bias=False): uniform(-1/sqrt(n), 1/sqrt(n))
    bound = 1.0 / np.sqrt(N_QUBITS)
    w_lin = jax.random.uniform(k_lin, (1, N_QUBITS),
                               minval=-bound, maxval=bound, dtype=jnp.float32)
    # input angles
    x = jax.random.uniform(k_x, (BATCH, N_QUBITS),
                           minval=0.0, maxval=2.0 * np.pi, dtype=jnp.float32)

    weights_np = np.asarray(weights, dtype=np.float64)
    w_lin_np = np.asarray(w_lin, dtype=np.float64)
    x_np = np.asarray(x, dtype=np.float64)

    r0, tables, sw_row, signs = _build_tables(weights_np, w_lin_np)
    tables_j = None if tables is None else jnp.asarray(tables)

    out = quantum_regression_forward(
        x, jnp.asarray(r0), tables_j, jnp.asarray(sw_row))
    out = jax.block_until_ready(out)

    ref = reference_forward(x_np, weights_np, w_lin_np, signs)
    np.testing.assert_allclose(np.asarray(out), ref, rtol=1e-3, atol=1e-4)

    print("KERNEL_OK")
</pallas_src>

<mosaic_0001>
module attributes {stable_mosaic.version = 11 : i64} {
  func.func @kernel(%arg0: memref<8x4xf32, #tpu.memory_space<vmem>>, %arg1: memref<16x32xf32, #tpu.memory_space<vmem>>, %arg2: memref<1x32xf32, #tpu.memory_space<vmem>>, %arg3: memref<8x1xf32, #tpu.memory_space<vmem>>) attributes {dimension_semantics = [], scalar_prefetch = 0 : i64, scratch_operands = 0 : i64, tpu.core_type = #tpu.core_type<tc>} {
    %c0 = arith.constant 0 : index
    %c0_0 = arith.constant 0 : index
    %0 = vector.load %arg0[%c0, %c0_0] : memref<8x4xf32, #tpu.memory_space<vmem>>, vector<8x4xf32>
    %cst = arith.constant 5.000000e-01 : f32
    %1 = vector.broadcast %cst : f32 to vector<8x4xf32>
    %2 = arith.mulf %1, %0 : vector<8x4xf32>
    %3 = math.cos %2 : vector<8x4xf32>
    %cst_1 = arith.constant 5.000000e-01 : f32
    %4 = vector.broadcast %cst_1 : f32 to vector<8x4xf32>
    %5 = arith.mulf %4, %0 : vector<8x4xf32>
    %6 = math.sin %5 : vector<8x4xf32>
    %7 = tpu.iota {dimensions = array<i32: 1>} : vector<8x16xi32>
    %c3_i32 = arith.constant 3 : i32
    %8 = vector.broadcast %c3_i32 : i32 to vector<8x16xi32>
    %9 = arith.shrsi %7, %8 : vector<8x16xi32>
    %c1_i32 = arith.constant 1 : i32
    %10 = vector.broadcast %c1_i32 : i32 to vector<8x16xi32>
    %11 = arith.andi %9, %10 : vector<8x16xi32>
    %12 = arith.sitofp %11 : vector<8x16xi32> to vector<8x16xf32>
    %13 = vector.extract_strided_slice %3 {offsets = [0, 0], sizes = [8, 1], strides = [1, 1]} : vector<8x4xf32> to vector<8x1xf32>
    %14 = vector.extract_strided_slice %6 {offsets = [0, 0], sizes = [8, 1], strides = [1, 1]} : vector<8x4xf32> to vector<8x1xf32>
    %15 = vector.extract_strided_slice %3 {offsets = [0, 0], sizes = [8, 1], strides = [1, 1]} : vector<8x4xf32> to vector<8x1xf32>
    %16 = arith.subf %14, %15 : vector<8x1xf32>
    %17 = vector.broadcast %16 : vector<8x1xf32> to vector<8x16xf32>
    %18 = arith.mulf %12, %17 : vector<8x16xf32>
    %19 = vector.broadcast %13 : vector<8x1xf32> to vector<8x16xf32>
    %20 = arith.addf %19, %18 : vector<8x16xf32>
    %c2_i32 = arith.constant 2 : i32
    %21 = vector.broadcast %c2_i32 : i32 to vector<8x16xi32>
    %22 = arith.shrsi %7, %21 : vector<8x16xi32>
    %c1_i32_2 = arith.constant 1 : i32
    %23 = vector.broadcast %c1_i32_2 : i32 to vector<8x16xi32>
    %24 = arith.andi %22, %23 : vector<8x16xi32>
    %25 = arith.sitofp %24 : vector<8x16xi32> to vector<8x16xf32>
    %26 = vector.extract_strided_slice %3 {offsets = [0, 1], sizes = [8, 1], strides = [1, 1]} : vector<8x4xf32> to vector<8x1xf32>
    %27 = vector.extract_strided_slice %6 {offsets = [0, 1], sizes = [8, 1], strides = [1, 1]} : vector<8x4xf32> to vector<8x1xf32>
    %28 = vector.extract_strided_slice %3 {offsets = [0, 1], sizes = [8, 1], strides = [1, 1]} : vector<8x4xf32> to vector<8x1xf32>
    %29 = arith.subf %27, %28 : vector<8x1xf32>
    %30 = vector.broadcast %29 : vector<8x1xf32> to vector<8x16xf32>
    %31 = arith.mulf %25, %30 : vector<8x16xf32>
    %32 = vector.broadcast %26 : vector<8x1xf32> to vector<8x16xf32>
    %33 = arith.addf %32, %31 : vector<8x16xf32>
    %34 = arith.mulf %20, %33 : vector<8x16xf32>
    %c1_i32_3 = arith.constant 1 : i32
    %35 = vector.broadcast %c1_i32_3 : i32 to vector<8x16xi32>
    %36 = arith.shrsi %7, %35 : vector<8x16xi32>
    %c1_i32_4 = arith.constant 1 : i32
    %37 = vector.broadcast %c1_i32_4 : i32 to vector<8x16xi32>
    %38 = arith.andi %36, %37 : vector<8x16xi32>
    %39 = arith.sitofp %38 : vector<8x16xi32> to vector<8x16xf32>
    %40 = vector.extract_strided_slice %3 {offsets = [0, 2], sizes = [8, 1], strides = [1, 1]} : vector<8x4xf32> to vector<8x1xf32>
    %41 = vector.extract_strided_slice %6 {offsets = [0, 2], sizes = [8, 1], strides = [1, 1]} : vector<8x4xf32> to vector<8x1xf32>
    %42 = vector.extract_strided_slice %3 {offsets = [0, 2], sizes = [8, 1], strides = [1, 1]} : vector<8x4xf32> to vector<8x1xf32>
    %43 = arith.subf %41, %42 : vector<8x1xf32>
    %44 = vector.broadcast %43 : vector<8x1xf32> to vector<8x16xf32>
    %45 = arith.mulf %39, %44 : vector<8x16xf32>
    %46 = vector.broadcast %40 : vector<8x1xf32> to vector<8x16xf32>
    %47 = arith.addf %46, %45 : vector<8x16xf32>
    %48 = arith.mulf %34, %47 : vector<8x16xf32>
    %c0_i32 = arith.constant 0 : i32
    %49 = vector.broadcast %c0_i32 : i32 to vector<8x16xi32>
    %50 = arith.shrsi %7, %49 : vector<8x16xi32>
    %c1_i32_5 = arith.constant 1 : i32
    %51 = vector.broadcast %c1_i32_5 : i32 to vector<8x16xi32>
    %52 = arith.andi %50, %51 : vector<8x16xi32>
    %53 = arith.sitofp %52 : vector<8x16xi32> to vector<8x16xf32>
    %54 = vector.extract_strided_slice %3 {offsets = [0, 3], sizes = [8, 1], strides = [1, 1]} : vector<8x4xf32> to vector<8x1xf32>
    %55 = vector.extract_strided_slice %6 {offsets = [0, 3], sizes = [8, 1], strides = [1, 1]} : vector<8x4xf32> to vector<8x1xf32>
    %56 = vector.extract_strided_slice %3 {offsets = [0, 3], sizes = [8, 1], strides = [1, 1]} : vector<8x4xf32> to vector<8x1xf32>
    %57 = arith.subf %55, %56 : vector<8x1xf32>
    %58 = vector.broadcast %57 : vector<8x1xf32> to vector<8x16xf32>
    %59 = arith.mulf %53, %58 : vector<8x16xf32>
    %60 = vector.broadcast %54 : vector<8x1xf32> to vector<8x16xf32>
    %61 = arith.addf %60, %59 : vector<8x16xf32>
    %62 = arith.mulf %48, %61 : vector<8x16xf32>
    %c0_6 = arith.constant 0 : index
    %c0_7 = arith.constant 0 : index
    %63 = vector.load %arg1[%c0_6, %c0_7] : memref<16x32xf32, #tpu.memory_space<vmem>>, vector<16x32xf32>
    %64 = vector.extract_strided_slice %62 {offsets = [0, 0], sizes = [8, 1], strides = [1, 1]} : vector<8x16xf32> to vector<8x1xf32>
    %65 = vector.extract_strided_slice %63 {offsets = [0, 0], sizes = [1, 32], strides = [1, 1]} : vector<16x32xf32> to vector<1x32xf32>
    %66 = vector.broadcast %64 : vector<8x1xf32> to vector<8x32xf32>
    %67 = vector.broadcast %65 : vector<1x32xf32> to vector<8x32xf32>
    %68 = arith.mulf %66, %67 : vector<8x32xf32>
    %69 = vector.extract_strided_slice %62 {offsets = [0, 1], sizes = [8, 1], strides = [1, 1]} : vector<8x16xf32> to vector<8x1xf32>
    %70 = vector.extract_strided_slice %63 {offsets = [1, 0], sizes = [1, 32], strides = [1, 1]} : vector<16x32xf32> to vector<1x32xf32>
    %71 = vector.broadcast %69 : vector<8x1xf32> to vector<8x32xf32>
    %72 = vector.broadcast %70 : vector<1x32xf32> to vector<8x32xf32>
    %73 = arith.mulf %71, %72 : vector<8x32xf32>
    %74 = vector.extract_strided_slice %62 {offsets = [0, 2], sizes = [8, 1], strides = [1, 1]} : vector<8x16xf32> to vector<8x1xf32>
    %75 = vector.extract_strided_slice %63 {offsets = [2, 0], sizes = [1, 32], strides = [1, 1]} : vector<16x32xf32> to vector<1x32xf32>
    %76 = vector.broadcast %74 : vector<8x1xf32> to vector<8x32xf32>
    %77 = vector.broadcast %75 : vector<1x32xf32> to vector<8x32xf32>
    %78 = arith.mulf %76, %77 : vector<8x32xf32>
    %79 = vector.extract_strided_slice %62 {offsets = [0, 3], sizes = [8, 1], strides = [1, 1]} : vector<8x16xf32> to vector<8x1xf32>
    %80 = vector.extract_strided_slice %63 {offsets = [3, 0], sizes = [1, 32], strides = [1, 1]} : vector<16x32xf32> to vector<1x32xf32>
    %81 = vector.broadcast %79 : vector<8x1xf32> to vector<8x32xf32>
    %82 = vector.broadcast %80 : vector<1x32xf32> to vector<8x32xf32>
    %83 = arith.mulf %81, %82 : vector<8x32xf32>
    %84 = vector.extract_strided_slice %62 {offsets = [0, 4], sizes = [8, 1], strides = [1, 1]} : vector<8x16xf32> to vector<8x1xf32>
    %85 = vector.extract_strided_slice %63 {offsets = [4, 0], sizes = [1, 32], strides = [1, 1]} : vector<16x32xf32> to vector<1x32xf32>
    %86 = vector.broadcast %84 : vector<8x1xf32> to vector<8x32xf32>
    %87 = vector.broadcast %85 : vector<1x32xf32> to vector<8x32xf32>
    %88 = arith.mulf %86, %87 : vector<8x32xf32>
    %89 = vector.extract_strided_slice %62 {offsets = [0, 5], sizes = [8, 1], strides = [1, 1]} : vector<8x16xf32> to vector<8x1xf32>
    %90 = vector.extract_strided_slice %63 {offsets = [5, 0], sizes = [1, 32], strides = [1, 1]} : vector<16x32xf32> to vector<1x32xf32>
    %91 = vector.broadcast %89 : vector<8x1xf32> to vector<8x32xf32>
    %92 = vector.broadcast %90 : vector<1x32xf32> to vector<8x32xf32>
    %93 = arith.mulf %91, %92 : vector<8x32xf32>
    %94 = vector.extract_strided_slice %62 {offsets = [0, 6], sizes = [8, 1], strides = [1, 1]} : vector<8x16xf32> to vector<8x1xf32>
    %95 = vector.extract_strided_slice %63 {offsets = [6, 0], sizes = [1, 32], strides = [1, 1]} : vector<16x32xf32> to vector<1x32xf32>
    %96 = vector.broadcast %94 : vector<8x1xf32> to vector<8x32xf32>
    %97 = vector.broadcast %95 : vector<1x32xf32> to vector<8x32xf32>
    %98 = arith.mulf %96, %97 : vector<8x32xf32>
    %99 = vector.extract_strided_slice %62 {offsets = [0, 7], sizes = [8, 1], strides = [1, 1]} : vector<8x16xf32> to vector<8x1xf32>
    %100 = vector.extract_strided_slice %63 {offsets = [7, 0], sizes = [1, 32], strides = [1, 1]} : vector<16x32xf32> to vector<1x32xf32>
    %101 = vector.broadcast %99 : vector<8x1xf32> to vector<8x32xf32>
    %102 = vector.broadcast %100 : vector<1x32xf32> to vector<8x32xf32>
    %103 = arith.mulf %101, %102 : vector<8x32xf32>
    %104 = vector.extract_strided_slice %62 {offsets = [0, 8], sizes = [8, 1], strides = [1, 1]} : vector<8x16xf32> to vector<8x1xf32>
    %105 = vector.extract_strided_slice %63 {offsets = [8, 0], sizes = [1, 32], strides = [1, 1]} : vector<16x32xf32> to vector<1x32xf32>
    %106 = vector.broadcast %104 : vector<8x1xf32> to vector<8x32xf32>
    %107 = vector.broadcast %105 : vector<1x32xf32> to vector<8x32xf32>
    %108 = arith.mulf %106, %107 : vector<8x32xf32>
    %109 = vector.extract_strided_slice %62 {offsets = [0, 9], sizes = [8, 1], strides = [1, 1]} : vector<8x16xf32> to vector<8x1xf32>
    %110 = vector.extract_strided_slice %63 {offsets = [9, 0], sizes = [1, 32], strides = [1, 1]} : vector<16x32xf32> to vector<1x32xf32>
    %111 = vector.broadcast %109 : vector<8x1xf32> to vector<8x32xf32>
    %112 = vector.broadcast %110 : vector<1x32xf32> to vector<8x32xf32>
    %113 = arith.mulf %111, %112 : vector<8x32xf32>
    %114 = vector.extract_strided_slice %62 {offsets = [0, 10], sizes = [8, 1], strides = [1, 1]} : vector<8x16xf32> to vector<8x1xf32>
    %115 = vector.extract_strided_slice %63 {offsets = [10, 0], sizes = [1, 32], strides = [1, 1]} : vector<16x32xf32> to vector<1x32xf32>
    %116 = vector.broadcast %114 : vector<8x1xf32> to vector<8x32xf32>
    %117 = vector.broadcast %115 : vector<1x32xf32> to vector<8x32xf32>
    %118 = arith.mulf %116, %117 : vector<8x32xf32>
    %119 = vector.extract_strided_slice %62 {offsets = [0, 11], sizes = [8, 1], strides = [1, 1]} : vector<8x16xf32> to vector<8x1xf32>
    %120 = vector.extract_strided_slice %63 {offsets = [11, 0], sizes = [1, 32], strides = [1, 1]} : vector<16x32xf32> to vector<1x32xf32>
    %121 = vector.broadcast %119 : vector<8x1xf32> to vector<8x32xf32>
    %122 = vector.broadcast %120 : vector<1x32xf32> to vector<8x32xf32>
    %123 = arith.mulf %121, %122 : vector<8x32xf32>
    %124 = vector.extract_strided_slice %62 {offsets = [0, 12], sizes = [8, 1], strides = [1, 1]} : vector<8x16xf32> to vector<8x1xf32>
    %125 = vector.extract_strided_slice %63 {offsets = [12, 0], sizes = [1, 32], strides = [1, 1]} : vector<16x32xf32> to vector<1x32xf32>
    %126 = vector.broadcast %124 : vector<8x1xf32> to vector<8x32xf32>
    %127 = vector.broadcast %125 : vector<1x32xf32> to vector<8x32xf32>
    %128 = arith.mulf %126, %127 : vector<8x32xf32>
    %129 = vector.extract_strided_slice %62 {offsets = [0, 13], sizes = [8, 1], strides = [1, 1]} : vector<8x16xf32> to vector<8x1xf32>
    %130 = vector.extract_strided_slice %63 {offsets = [13, 0], sizes = [1, 32], strides = [1, 1]} : vector<16x32xf32> to vector<1x32xf32>
    %131 = vector.broadcast %129 : vector<8x1xf32> to vector<8x32xf32>
    %132 = vector.broadcast %130 : vector<1x32xf32> to vector<8x32xf32>
    %133 = arith.mulf %131, %132 : vector<8x32xf32>
    %134 = vector.extract_strided_slice %62 {offsets = [0, 14], sizes = [8, 1], strides = [1, 1]} : vector<8x16xf32> to vector<8x1xf32>
    %135 = vector.extract_strided_slice %63 {offsets = [14, 0], sizes = [1, 32], strides = [1, 1]} : vector<16x32xf32> to vector<1x32xf32>
    %136 = vector.broadcast %134 : vector<8x1xf32> to vector<8x32xf32>
    %137 = vector.broadcast %135 : vector<1x32xf32> to vector<8x32xf32>
    %138 = arith.mulf %136, %137 : vector<8x32xf32>
    %139 = vector.extract_strided_slice %62 {offsets = [0, 15], sizes = [8, 1], strides = [1, 1]} : vector<8x16xf32> to vector<8x1xf32>
    %140 = vector.extract_strided_slice %63 {offsets = [15, 0], sizes = [1, 32], strides = [1, 1]} : vector<16x32xf32> to vector<1x32xf32>
    %141 = vector.broadcast %139 : vector<8x1xf32> to vector<8x32xf32>
    %142 = vector.broadcast %140 : vector<1x32xf32> to vector<8x32xf32>
    %143 = arith.mulf %141, %142 : vector<8x32xf32>
    %144 = arith.addf %68, %73 : vector<8x32xf32>
    %145 = arith.addf %78, %83 : vector<8x32xf32>
    %146 = arith.addf %88, %93 : vector<8x32xf32>
    %147 = arith.addf %98, %103 : vector<8x32xf32>
    %148 = arith.addf %108, %113 : vector<8x32xf32>
    %149 = arith.addf %118, %123 : vector<8x32xf32>
    %150 = arith.addf %128, %133 : vector<8x32xf32>
    %151 = arith.addf %138, %143 : vector<8x32xf32>
    %152 = arith.addf %144, %145 : vector<8x32xf32>
    %153 = arith.addf %146, %147 : vector<8x32xf32>
    %154 = arith.addf %148, %149 : vector<8x32xf32>
    %155 = arith.addf %150, %151 : vector<8x32xf32>
    %156 = arith.addf %152, %153 : vector<8x32xf32>
    %157 = arith.addf %154, %155 : vector<8x32xf32>
    %158 = arith.addf %156, %157 : vector<8x32xf32>
    %159 = arith.mulf %158, %158 : vector<8x32xf32>
    %c0_8 = arith.constant 0 : index
    %c0_9 = arith.constant 0 : index
    %160 = vector.load %arg2[%c0_8, %c0_9] : memref<1x32xf32, #tpu.memory_space<vmem>>, vector<1x32xf32>
    %161 = vector.broadcast %160 : vector<1x32xf32> to vector<8x32xf32>
    %162 = arith.mulf %159, %161 : vector<8x32xf32>
    %cst_10 = arith.constant dense<0.000000e+00> : vector<8xf32>
    %163 = vector.multi_reduction <add>, %162, %cst_10 [1] : vector<8x32xf32> to vector<8xf32>
    %164 = vector.shape_cast %163 : vector<8xf32> to vector<8x1xf32>
    %c0_11 = arith.constant 0 : index
    %c0_12 = arith.constant 0 : index
    %165 = vector.load %arg3[%c0_11, %c0_12] : memref<8x1xf32, #tpu.memory_space<vmem>>, vector<8x1xf32>
    tpu.vector_store %arg3[%c0_11, %c0_12], %164 {strides = array<i32>} : memref<8x1xf32, #tpu.memory_space<vmem>>, vector<8x1xf32>,
    return
  }
}

</mosaic_0001>

<bundles_post_ra>
// kernel: tpu_custom_call.1
= control target key start
LH: loop header
LB: loop body
LE: loop exit
PB: predicated region body
PF: predicated region fallthrough
CT: control target
= control target key end

     0   :  { %8 = vsyncpa [#allocation3], 0  ;;  %s567_s12 = smov [#allocation2]   ;;  %s659_s0 = inlined_call_operand.vmem [shape: f32[8,4], index: 0, kind: input, shape index: {}]   ;;  %s660_s1 = inlined_call_operand.hbm [shape: f32[16,32], index: 1, kind: input, shape index: {}]   ;;  %s661_s2 = inlined_call_operand.vmem [shape: f32[1,32], index: 2, kind: input, shape index: {}]   ;;  %s662_s3 = inlined_call_operand.vmem [shape: f32[8,1], index: 3, kind: output, shape index: {}]  }
   0x1   :  { %s16_s13 = sshll.u32 %s567_s12, 4  ;;  %s543_s16 = scalar_lea.hbm %s660_s1, 256  ;;  %s17_s13 = int_to_ptr.vmem [resolvable:$true] %s16_s13 }
   0x2   :  { %p544_p0 = scmp.ne.s32.totalorder %s660_s1, %s543_s16  ;;  %p547_p1 = scmp.lt.u32.totalorder %s543_s16, %s660_s1 }
   0x4   :  { %p549_p2 = pnand %p547_p1, %p544_p0 }
   0x6   :  { %552 = shalt.err (!%p549_p2)
}
   0x7   :  { %s553_s21 = scalar_lea.vmem %s17_s13, 256  ;;  %p558_p4 = scmp.lt.s32.totalorder %s17_s13, %s17_s13 }
   0x8   :  { %p554_p3 = scmp.ne.s32.totalorder %s17_s13, %s553_s21  ;;  %p559_p5 = scmp.lt.s32.totalorder %s553_s21, %s553_s21 }
   0xa   :  { %p560_p6 = por %p559_p5, %p558_p4 }
   0xc   :  { %p561_p7 = pnand %p560_p6, %p554_p3 }
   0xe   :  { %564 = shalt.err (!%p561_p7)
}
   0xf   :  { %s568_s22 = smov 128   ;;  %s569_s23 = smov 8  }
  0x10   :  { %22 = dma.hbm_to_vmem [thread:$0]  %s660_s1, 256, %s17_s13, [#allocation3], %s568_s22, %s568_s22, %s569_s23  }
  0x11   :  { %565 = dma.done.wait [#allocation3], 256  }
  0x12   :  { %566 = vsyncadd [#allocation3], 4294967040  ;;  %v570_v0 = vmov 0   ;;  %v28_v1 = vld [vmem:[%s659_s0] sm:$0xff]  ;;  %v571_v14 = vmov 683565275  }
  0x13   :  { %516 = vset.pattern.permute.xlu1 %v570_v0  ;;  %518 = vset.pattern.permute.xlu0 %v570_v0  ;;  %v629_v2 = vmul.f32 0.5, %v28_v1  ;;  %v572_v16 = vmov 2475754826   ;;  %v573_v18 = vmov 2131351028  }
  0x14   :  { %v574_v20 = vmov 2102212464   ;;  %v575_v22 = vmov 920167782   ;;  %v576_v29 = vmov 1326507024  }
  0x15   :  { %v33_v3 = vand.u32 2139095040, %v629_v2  ;;  %v30_v5 = vand.u32 2147483647, %v629_v2  ;;  %vm32_vm7 = vcmp.lt.s32.totalorder %v629_v2, 0  ;;  %vm122_vm15 = vweird.f32 %v629_v2 }
  0x17   :  { %v34_v4 = vshrl.u32 %v33_v3, 23  ;;  %v37_v8 = vand.u32 8388607, %v30_v5  ;;  %vm31_vm8 = vcmp.le.f32.partialorder %v30_v5, 0.7853982 }
  0x19   :  { %v478_v6 = vadd.s32 4294967169, %v34_v4  ;;  %v38_v11 = vor.u32 8388608, %v37_v8 }
  0x1b   :  { %v40_v7 = vadd.s32 1, %v478_v6  ;;  %v78_v31 = vshll.u32 %v38_v11, 8 }
  0x1d   :  { %vm41_vm0 = vcmp.gt.s32.totalorder %v40_v7, 0 }
  0x1e   :  { %v42_v9 = vsel %vm41_vm0, %v40_v7, 0  ;;  %vm467_vm0 = vcmask 261120  }
  0x1f   :  { %v44_v10 = vand.u32 31, %v42_v9  ;;  %v43_v12 = vshrl.u32 %v42_v9, 5 }
  0x21   :  { %v45_v13 = vsub.s32 32, %v44_v10  ;;  %v47_v15 = vshll.u32 %v571_v14, %v44_v10  ;;  %v50_v17 = vshll.u32 %v572_v16, %v44_v10  ;;  %v53_v19 = vshll.u32 %v573_v18, %v44_v10 }
  0x22   :  { %v56_v21 = vshll.u32 %v574_v20, %v44_v10  ;;  %v59_v23 = vshll.u32 %v575_v22, %v44_v10  ;;  %vm62_vm1 = vcmp.lt.s32.totalorder %v43_v12, 1  ;;  %vm65_vm2 = vcmp.lt.s32.totalorder %v43_v12, 4 }
  0x23   :  { %v46_v24 = vshrl.u32 %v571_v14, %v45_v13  ;;  %v48_v25 = vshrl.u32 %v572_v16, %v45_v13  ;;  %v51_v26 = vshrl.u32 %v573_v18, %v45_v13  ;;  %v54_v27 = vshrl.u32 %v574_v20, %v45_v13 }
  0x24   :  { %v57_v28 = vshrl.u32 %v575_v22, %v45_v13  ;;  %v60_v30 = vshrl.u32 %v576_v29, %v45_v13  ;;  %vm63_vm3 = vcmp.lt.s32.totalorder %v43_v12, 2  ;;  %vm64_vm4 = vcmp.lt.s32.totalorder %v43_v12, 3 }
  0x25   :  { %v49_v32 = vor.u32 %v48_v25, %v47_v15  ;;  %v52_v33 = vor.u32 %v51_v26, %v50_v17  ;;  %v55_v34 = vor.u32 %v54_v27, %v53_v19 }
  0x26   :  { %v58_v35 = vor.u32 %v57_v28, %v56_v21  ;;  %v61_v36 = vor.u32 %v60_v30, %v59_v23 }
  0x27   :  { %v66_v37 = vsel %vm62_vm1, %v46_v24, %v49_v32  ;;  %v67_v38 = vsel %vm65_vm2, %v55_v34, 2102212464  ;;  %v70_v39 = vsel %vm62_vm1, %v49_v32, %v52_v33  ;;  %v74_v40 = vsel %vm62_vm1, %v52_v33, %v55_v34 }
  0x28   :  { %v68_v41 = vsel %vm64_vm4, %v52_v33, %v67_v38  ;;  %v71_v42 = vsel %vm65_vm2, %v58_v35, 920167782  ;;  %v75_v43 = vsel %vm65_vm2, %v61_v36, 1326507024  ;;  %v577_v38 = vmov 1  }
  0x29   :  { %v72_v44 = vsel %vm64_vm4, %v55_v34, %v71_v42  ;;  %v76_v45 = vsel %vm64_vm4, %v58_v35, %v75_v43  ;;  %v69_v46 = vsel %vm63_vm3, %v66_v37, %v68_v41  ;;  %vm471_vm1 = vcmask 7168  }
  0x2a   :  { %v73_v47 = vsel %vm63_vm3, %v70_v39, %v72_v44  ;;  %v77_v48 = vsel %vm63_vm3, %v74_v40, %v76_v45  ;;  %v85_v53 = vmul.u32 %v78_v31, %v69_v46  ;;  %v578_v39 = vmov 2  }
  0x2b   :  { %v635_v49 = vmul.u32.u64.low %v78_v31, %v77_v48  ;;  %v636_v50 = vmul.u32.u64.high %v78_v31, %v77_v48, %v635_v49  ;;  %v638_v51 = vmul.u32.u64.low %v78_v31, %v73_v47  ;;  %v639_v52 = vmul.u32.u64.high %v78_v31, %v73_v47, %v638_v51 }
  0x2c   :  { %v237_v40 = vlaneseq }
  0x2d   :  { %vm87_vm5 = vc.u32 %v636_v50, %v638_v51  ;;  %v88_v54 = vadd.s32 1, %v639_v52  ;;  %v86_v3 = vadd.s32 %v638_v51, %v636_v50 }
  0x2e   :  { %v238_v41 = vand.u32 127, %v237_v40 }
  0x2f   :  { %v89_v55 = vsel %vm87_vm5, %v88_v54, %v639_v52 }
  0x30   :  { %v90_v56 = vadd.s32 %v89_v55, %v85_v53  ;;  %v255_v42 = vshra.s32 %v238_v41, 2  ;;  %v239_v43 = vshra.s32 %v238_v41, 3  ;;  %v269_v46 = vshra.s32 %v238_v41, 1 }
  0x32   :  { %v91_v57 = vadd.s32 536870912, %v90_v56  ;;  %v256_v45 = vand.u32 1, %v255_v42  ;;  %v240_v47 = vand.u32 1, %v239_v43  ;;  %v270_v50 = vand.u32 1, %v269_v46  ;;  %v297_v43 = vld [vmem:[#allocation2 + $0x8] sm:$0xff] }
  0x34   :  { %v92_v58 = vshrl.u32 %v91_v57, 30  ;;  %v257_v49 = vcvt.s32.f32 %v256_v45  ;;  %v241_v52 = vcvt.s32.f32 %v240_v47  ;;  %v271_v55 = vcvt.s32.f32 %v270_v50 }
  0x35   :  { %v283_v57 = vand.u32 1, %v238_v41 }
  0x36   :  { %v93_v59 = vshll.u32 %v92_v58, 30  ;;  %v116_v16 = vsub.s32 4, %v92_v58 }
  0x38   :  { %v94_v60 = vsub.s32 %v90_v56, %v93_v59  ;;  %v117_v19 = vsel %vm32_vm7, %v116_v16, %v92_v58  ;;  %v586_v16 = vmov 8  }
  0x39   :  { %v119_v22 = vsel %vm31_vm8, 0, %v117_v19  ;;  %v589_v19 = vmov 11  }
  0x3a   :  { %v96_v61 = vsub.s32 0, %v94_v60  ;;  %v226_v23 = vadd.s32 3, %v119_v22  ;;  %v123_v24 = vand.u32 3, %v119_v22 }
  0x3c   :  { %v479_v62 = vmin.u32 %v96_v61, %v94_v60  ;;  %v227_v25 = vand.u32 3, %v226_v23  ;;  %vm128_vm9 = vcmp.eq.s32.totalorder %v123_v24, 2  ;;  %vm125_vm11 = vcmp.eq.s32.totalorder %v123_v24, 0 }
  0x3d   :  { %vm124_vm13 = vcmp.lt.s32.totalorder %v123_v24, 2 }
  0x3e   :  { %v98_v63 = vclz %v479_v62  ;;  %vm232_vm10 = vcmp.eq.s32.totalorder %v227_v25, 2  ;;  %vm229_vm12 = vcmp.eq.s32.totalorder %v227_v25, 0  ;;  %vm228_vm14 = vcmp.lt.s32.totalorder %v227_v25, 2 }
  0x3f   :  { %v284_v62 = vcvt.s32.f32 %v283_v57 }
  0x40   :  { %v480_v1 = vadd.s32 4294967294, %v98_v63 }
  0x42   :  { %vm481_vm6 = vcmp.lt.s32.totalorder %v480_v1, 0 }
  0x43   :  { %v101_v4 = vsel %vm481_vm6, 0, %v480_v1 }
  0x44   :  { %v102_v6 = vsub.s32 32, %v101_v4  ;;  %v103_v7 = vshll.u32 %v94_v60, %v101_v4  ;;  %v106_v8 = vsub.s32 4294967266, %v101_v4 }
  0x46   :  { %v104_v9 = vshrl.u32 %v86_v3, %v102_v6  ;;  %v107_v10 = vadd.s32 127, %v106_v8 }
  0x48   :  { %v105_v11 = vor.u32 %v104_v9, %v103_v7  ;;  %v108_v12 = vshll.u32 %v107_v10, 23  ;;  %v580_v10 = vmov 4  }
  0x4a   :  { %v109_v13 = vor.u32 4788187, %v108_v12  ;;  %v112_v14 = vcvt.s32.f32 %v105_v11  ;;  %v581_v11 = vmov 6   ;;  %v582_v12 = vmov 5  }
  0x4c   :  { %v110_v15 = vand.u32 2147483647, %v109_v13  ;;  %v583_v13 = vmov 9  }
  0x4e   :  { %v113_v17 = vmul.f32 %v112_v14, %v110_v15  ;;  %v584_v14 = vmov 7   ;;  %v585_v15 = vmov 12  }
  0x50   :  { %v114_v18 = vxor.u32 2147483648, %v113_v17 }
  0x52   :  { %v115_v20 = vsel %vm32_vm7, %v114_v18, %v113_v17  ;;  %v587_v17 = vmov 15   ;;  %v588_v18 = vmov 10  }
  0x53   :  { %v118_v21 = vsel %vm31_vm8, %v629_v2, %v115_v20  ;;  %v579_v2 = vmov 3   ;;  %v590_v20 = vmov 13  }
  0x54   :  { %539 = vcosq.f32 %v118_v21 }
  0x55   :  { %541 = vsinq.f32 %v118_v21  ;;  %v591_v21 = vmov 14  }
  0x5e   :  { %v540_v26 = vpop.eup %539 }
  0x5f   :  { %v542_v27 = vpop.eup %541  ;;  %v129_v28 = vxor.u32 2147483648, %v540_v26 }
  0x60   :  { %v126_v5 = vxor.u32 2147483648, %v542_v27 }
  0x61   :  { %v130_v29 = vsel %vm128_vm9, %v129_v28, %v542_v27  ;;  %v234_v30 = vsel %vm232_vm10, %v129_v28, %v542_v27 }
  0x62   :  { %v127_v31 = vsel %vm125_vm11, %v540_v26, %v126_v5  ;;  %v231_v32 = vsel %vm229_vm12, %v540_v26, %v126_v5 }
  0x63   :  { %v131_v33 = vsel %vm124_vm13, %v127_v31, %v130_v29  ;;  %v235_v34 = vsel %vm228_vm14, %v231_v32, %v234_v30  ;;  %v304_v30 = vshrl.u32 %v237_v40, 7 }
  0x64   :  { %v132_v35 = vsel %vm122_vm15, nan, %v131_v33  ;;  %v236_v36 = vsel %vm122_vm15, nan, %v235_v34 }
  0x65   :  { %251 = vperm.xlu1 %516, %v132_v35   ;;  %v242_v37 = vsub.f32 %v236_v36, %v132_v35  ;;  %v368_v33 = vsub.s32 7, %v304_v30  ;;  %v323_v34 = vsub.s32 2, %v304_v30  ;;  %v350_v36 = vsub.s32 5, %v304_v30 }
  0x66   :  { %v341_v41 = vsub.s32 4, %v304_v30 }
  0x67   :  { %245 = vperm.xlu0 %518, %v242_v37  }
  0x69   :  { %517 = vset.pattern.permute.xlu1 %v577_v38 }
  0x6a   :  { %264 = vperm.xlu1 %517, %v132_v35  }
  0x6b   :  { %519 = vset.pattern.permute.xlu0 %v577_v38 }
  0x6c   :  { %259 = vperm.xlu0 %519, %v242_v37  }
  0x6e   :  { %521 = vset.pattern.permute.xlu1 %v578_v39 }
  0x6f   :  { %273 = vperm.xlu1 %521, %v242_v37  }
  0x70   :  { %520 = vset.pattern.permute.xlu0 %v578_v39 }
  0x71   :  { %278 = vperm.xlu0 %520, %v132_v35  }
  0x73   :  { %522 = vset.pattern.permute.xlu1 %v579_v2 }
  0x74   :  { %286 = vperm.xlu1 %522, %v242_v37   ;;  %v359_v37 = vsub.s32 6, %v304_v30 }
  0x75   :  { %523 = vset.pattern.permute.xlu0 %v570_v0 }
  0x78   :  { %291 = vperm.xlu1 %522, %v132_v35   ;;  %v332_v35 = vsub.s32 3, %v304_v30 }
  0x7a   :  { %v405_v40 = vrot.slane %v297_v43, %v332_v35 }
  0x7c   :  { %524 = vset.pattern.permute.xlu1 %v577_v38  ;;  %v296_v38 = vld [vmem:[#allocation2] sm:$0xff] }
  0x7d   :  { %v324_v45 = vrot.slane %v296_v38, %v323_v34  ;;  %v333_v46 = vrot.slane %v296_v38, %v332_v35  ;;  %v351_v47 = vrot.slane %v296_v38, %v350_v36 }
  0xe4   :  { %v252_v44 = vpop.permute.xlu1 %251 }
  0xe6   :  { %v246_v48 = vpop.permute.xlu0 %245 }
  0xe7   :  { %v248_v0 = vmul.f32 %v246_v48, %v241_v52  ;;  %v342_v52 = vrot.slane %v296_v38, %v341_v41 }
  0xe9   :  { %v265_v51 = vpop.permute.xlu1 %264  ;;  %v254_v61 = vadd.f32 %v252_v44, %v248_v0  ;;  %v369_v44 = vrot.slane %v296_v38, %v368_v33  ;;  %v396_v0 = vrot.slane %v297_v43, %v323_v34 }
  0xeb   :  { %v260_v53 = vpop.permute.xlu0 %259 }
  0xec   :  { %v262_v54 = vmul.f32 %v260_v53, %v257_v49  ;;  %v360_v49 = vrot.slane %v296_v38, %v359_v37 }
  0xee   :  { %v274_v56 = vpop.permute.xlu1 %273  ;;  %v267_v58 = vadd.f32 %v265_v51, %v262_v54 }
  0xef   :  { %v276_v59 = vmul.f32 %v274_v56, %v271_v55  ;;  %v423_v56 = vrot.slane %v297_v43, %v350_v36 }
  0xf0   :  { %v279_v60 = vpop.permute.xlu0 %278  ;;  %v268_v1 = vmul.f32 %v267_v58, %v254_v61  ;;  %v414_v61 = vrot.slane %v297_v43, %v341_v41 }
  0xf1   :  { %v281_v3 = vadd.f32 %v279_v60, %v276_v59 }
  0xf3   :  { %v287_v63 = vpop.permute.xlu1 %286  ;;  %v282_v7 = vmul.f32 %v281_v3, %v268_v1  ;;  %v432_v3 = vrot.slane %v297_v43, %v359_v37 }
  0xf4   :  { %v289_v4 = vmul.f32 %v287_v63, %v284_v62  ;;  %v441_v63 = vrot.slane %v297_v43, %v368_v33 }
  0xf7   :  { %v292_v6 = vpop.permute.xlu1 %291 }
  0xf8   :  { %v294_v8 = vadd.f32 %v292_v6, %v289_v4 }
  0xfa   :  { %v295_v9 = vmul.f32 %v294_v8, %v282_v7 }
  0xfc   :  { %309 = vperm.xlu1 %524, %v295_v9   ;;  %300 = vperm.xlu0 %523, %v295_v9  }
 0x100   :  { %525 = vset.pattern.permute.xlu1 %v578_v39  ;;  %526 = vset.pattern.permute.xlu0 %v579_v2  ;;  %v314_v39 = vsub.s32 1, %v304_v30  ;;  %v305_v2 = vsub.s32 0, %v304_v30 }
 0x101   :  { %318 = vperm.xlu1 %525, %v295_v9   ;;  %327 = vperm.xlu0 %526, %v295_v9  }
 0x102   :  { %v315_v50 = vrot.slane %v296_v38, %v314_v39  ;;  %v306_v51 = vrot.slane %v296_v38, %v305_v2  ;;  %v387_v53 = vrot.slane %v297_v43, %v314_v39  ;;  %v378_v55 = vrot.slane %v297_v43, %v305_v2 }
 0x105   :  { %527 = vset.pattern.permute.xlu1 %v580_v10  ;;  %529 = vset.pattern.permute.xlu0 %v581_v11 }
 0x106   :  { %336 = vperm.xlu1 %527, %v295_v9   ;;  %354 = vperm.xlu0 %529, %v295_v9  }
 0x10a   :  { %528 = vset.pattern.permute.xlu1 %v582_v12  ;;  %532 = vset.pattern.permute.xlu0 %v583_v13 }
 0x10b   :  { %345 = vperm.xlu1 %528, %v295_v9   ;;  %381 = vperm.xlu0 %532, %v295_v9  }
 0x10f   :  { %530 = vset.pattern.permute.xlu1 %v584_v14  ;;  %535 = vset.pattern.permute.xlu0 %v585_v15 }
 0x110   :  { %363 = vperm.xlu1 %530, %v295_v9   ;;  %408 = vperm.xlu0 %535, %v295_v9  }
 0x114   :  { %531 = vset.pattern.permute.xlu1 %v586_v16  ;;  %538 = vset.pattern.permute.xlu0 %v587_v17 }
 0x115   :  { %372 = vperm.xlu1 %531, %v295_v9   ;;  %435 = vperm.xlu0 %538, %v295_v9  }
 0x119   :  { %533 = vset.pattern.permute.xlu1 %v588_v18 }
 0x11a   :  { %390 = vperm.xlu1 %533, %v295_v9  }
 0x11e   :  { %534 = vset.pattern.permute.xlu1 %v589_v19 }
 0x11f   :  { %399 = vperm.xlu1 %534, %v295_v9  }
 0x123   :  { %536 = vset.pattern.permute.xlu1 %v590_v20 }
 0x124   :  { %417 = vperm.xlu1 %536, %v295_v9  }
 0x128   :  { %537 = vset.pattern.permute.xlu1 %v591_v21 }
 0x129   :  { %426 = vperm.xlu1 %537, %v295_v9  }
 0x17b   :  { %v310_v22 = vpop.permute.xlu1 %309  ;;  %v301_v25 = vpop.permute.xlu0 %300 }
 0x17c   :  { %v316_v4 = vmul.f32 %v315_v50, %v310_v22  ;;  %v307_v6 = vmul.f32 %v306_v51, %v301_v25 }
 0x17e   :  { %v443_v21 = vadd.f32 %v316_v4, %v307_v6 }
 0x180   :  { %v319_v23 = vpop.permute.xlu1 %318  ;;  %v328_v27 = vpop.permute.xlu0 %327 }
 0x181   :  { %v325_v58 = vmul.f32 %v324_v45, %v319_v23  ;;  %v334_v59 = vmul.f32 %v333_v46, %v328_v27 }
 0x183   :  { %v444_v13 = vadd.f32 %v334_v59, %v325_v58 }
 0x185   :  { %v337_v24 = vpop.permute.xlu1 %336  ;;  %v355_v5 = vpop.permute.xlu0 %354  ;;  %v451_v25 = vadd.f32 %v444_v13, %v443_v21 }
 0x186   :  { %v361_v62 = vmul.f32 %v360_v49, %v355_v5  ;;  %v343_v7 = vmul.f32 %v342_v52, %v337_v24 }
 0x18a   :  { %v346_v26 = vpop.permute.xlu1 %345  ;;  %v382_v32 = vpop.permute.xlu0 %381 }
 0x18b   :  { %v352_v60 = vmul.f32 %v351_v47, %v346_v26  ;;  %v388_v15 = vmul.f32 %v387_v53, %v382_v32 }
 0x18d   :  { %v445_v14 = vadd.f32 %v352_v60, %v343_v7 }
 0x18f   :  { %v364_v28 = vpop.permute.xlu1 %363  ;;  %v409_v48 = vpop.permute.xlu0 %408 }
 0x190   :  { %v370_v54 = vmul.f32 %v369_v44, %v364_v28  ;;  %v415_v17 = vmul.f32 %v414_v61, %v409_v48 }
 0x192   :  { %v446_v9 = vadd.f32 %v370_v54, %v361_v62 }
 0x194   :  { %v373_v29 = vpop.permute.xlu1 %372  ;;  %v436_v8 = vpop.permute.xlu0 %435  ;;  %v452_v23 = vadd.f32 %v446_v9, %v445_v14 }
 0x195   :  { %v379_v10 = vmul.f32 %v378_v55, %v373_v29  ;;  %v442_v18 = vmul.f32 %v441_v63, %v436_v8 }
 0x196   :  { %v455_v5 = vadd.f32 %v452_v23, %v451_v25 }
 0x197   :  { %v447_v26 = vadd.f32 %v388_v15, %v379_v10 }
 0x199   :  { %v391_v31 = vpop.permute.xlu1 %390 }
 0x19a   :  { %v397_v11 = vmul.f32 %v396_v0, %v391_v31  ;;  %v486_v31 = vld [vmem:[%s661_s2] ss:$0 sm:$0xff] }
 0x19e   :  { %v400_v42 = vpop.permute.xlu1 %399 }
 0x19f   :  { %v406_v1 = vmul.f32 %v405_v40, %v400_v42 }
 0x1a1   :  { %v448_v19 = vadd.f32 %v406_v1, %v397_v11 }
 0x1a3   :  { %v418_v57 = vpop.permute.xlu1 %417  ;;  %v453_v24 = vadd.f32 %v448_v19, %v447_v26 }
 0x1a4   :  { %v424_v12 = vmul.f32 %v423_v56, %v418_v57 }
 0x1a6   :  { %v449_v27 = vadd.f32 %v424_v12, %v415_v17 }
 0x1a8   :  { %v427_v16 = vpop.permute.xlu1 %426 }
 0x1a9   :  { %v433_v20 = vmul.f32 %v432_v3, %v427_v16 }
 0x1ab   :  { %v450_v22 = vadd.f32 %v442_v18, %v433_v20 }
 0x1ad   :  { %v454_v28 = vadd.f32 %v450_v22, %v449_v27 }
 0x1af   :  { %v456_v29 = vadd.f32 %v454_v28, %v453_v24 }
 0x1b1   :  { %v457_v30 = vadd.f32 %v456_v29, %v455_v5 }
 0x1b3   :  { %v458_v32 = vmul.f32 %v457_v30, %v457_v30 }
 0x1b5   :  { %v466_v33 = vmul.f32 %v486_v31, %v458_v32 }
 0x1b7   :  { %v468_v34 = vsel %vm467_vm0, %v466_v33, 0.0 }
 0x1b8   :  { %469 = vadd.xlane.f32.xlu1 %v468_v34 }
 0x245   :  { %v470_v35 = vpop.xlane.xlu1 %469 }
 0x246   :  { %472 = vst.msk [vmem:[%s662_s3] sm:$0xff] %vm471_vm1, %v470_v35 }
 0x247   :  { %477 = vsyncpa [#allocation3], 1 }

</bundles_post_ra>
